<compile_context>
chip_gen: v7x
topology: tpu7x:2x2x1
jax: 0.10.0
libtpu: 0.0.40
codegen_flags: <defaults>
</compile_context>

<pallas_src>
import math
import jax
import jax.numpy as jnp
from jax import lax
from jax.experimental import pallas as pl
from jax.experimental.pallas import tpu as pltpu


def attention_kernel(q_ref, k_ref, v_ref, wqk_ref, bqk_ref, wv_ref, bv_ref,
                     out_ref):
    """Whole (small) problem resident in VMEM, single invocation.

    q_ref  : (B, dqk)         queries
    k_ref  : (B*R, dqk)       keys, flattened over (batch, retrieval)
    v_ref  : (B*R, dv)        values, flattened
    wqk_ref: (2, dqk, dqk)    [0] = Wq^T * 1/sqrt(dqk),  [1] = Wk^T
    bqk_ref: (2, dqk)         [0] = bq * 1/sqrt(dqk),    [1] = bk
    wv_ref : (dv, dv_pad)     Wv^T, zero-padded to lane-dense dv_pad
    bv_ref : (1, dv_pad)      bv, zero-padded
    out_ref: (B, dv_pad)
    """
    B = q_ref.shape[0]
    BR = k_ref.shape[0]
    R = BR // B

    # ---- the three Linear layers: MXU matmul + VPU bias add (VALU is idle) ----
    qh = jnp.dot(q_ref[...], wqk_ref[0],
                 preferred_element_type=jnp.float32) + bqk_ref[0:1, :]   # (B, dqk)
    kh = jnp.dot(k_ref[...], wqk_ref[1],
                 preferred_element_type=jnp.float32) + bqk_ref[1:2, :]   # (BR, dqk)
    vh = jnp.dot(v_ref[...], wv_ref[...],
                 preferred_element_type=jnp.float32) + bv_ref[...]       # (BR, dv_pad)

    # scores_full[b, j] = qh[b] . kh[j] on the MXU (contraction on last dims).
    # NOTE: dense (B, B*R) form is fine at tiny B; for large B switch to a
    # batch-dim dot_general / per-b tiling to avoid O(B^2 R) work and VMEM.
    scores = lax.dot_general(
        qh, kh, (((1,), (1,)), ((), ())),
        preferred_element_type=jnp.float32)                              # (B, BR)

    # Block-diagonal mask via a range test (no integer divide):
    # row b attends to columns [b*R, (b+1)*R).
    row = lax.broadcasted_iota(jnp.int32, (B, BR), 0)
    col = lax.broadcasted_iota(jnp.int32, (B, BR), 1)
    d = col - row * R
    in_block = jnp.logical_and(d >= 0, d < R)
    scores = jnp.where(in_block, scores, jnp.float32(-1e30))

    # Softmax over the (masked) lane axis; off-block entries underflow to 0.
    m = jnp.max(scores, axis=-1, keepdims=True)
    e = jnp.exp(scores - m)
    denom = jnp.sum(e, axis=-1, keepdims=True)

    # Aggregate first, normalize after (commutes with the V aggregation):
    aggr = jnp.dot(e, vh, preferred_element_type=jnp.float32)            # (B, dv_pad)
    out_ref[...] = aggr * pl.reciprocal(denom)   # exact (approx=False) for 1e-4 tol


def prepare_params(params, dim_qk, dim_v):
    """One-time (init/cache) parameter prep; input-independent.

    Folds the 1/sqrt(dim_qk) score scale into the Q weights/bias, transposes
    weights, and lane-pads the V projection so the kernel's final store is
    lane-dense.
    """
    dv_pad = ((dim_v + 127) // 128) * 128
    scale = jnp.float32(1.0 / math.sqrt(dim_qk))
    wqk = jnp.stack([params["wq"].T * scale, params["wk"].T], axis=0)   # (2, dqk, dqk)
    bqk = jnp.stack([params["bq"] * scale, params["bk"]], axis=0)       # (2, dqk)
    wv = jnp.pad(params["wv"].T, ((0, 0), (0, dv_pad - dim_v)))         # (dv, dv_pad)
    bv = jnp.pad(params["bv"], (0, dv_pad - dim_v))[None, :]            # (1, dv_pad)
    return {"wqk": wqk, "bqk": bqk, "wv": wv, "bv": bv,
            "dim_v": dim_v, "dv_pad": dv_pad}


def attention_pallas(q, k, v, prep):
    """q: (B, Dqk) f32, k: (B, R, Dqk) f32, v: (B, R, Dv) f32 -> (B, Dv)."""
    B, dqk = q.shape
    _, R, _ = k.shape
    dv = prep["dim_v"]
    dv_pad = prep["dv_pad"]

    # Free bitcast-reshapes; no per-call concatenations or weight math.
    k_flat = k.reshape(B * R, dqk)
    v_flat = v.reshape(B * R, dv)

    vmem = lambda: pl.BlockSpec(memory_space=pltpu.MemorySpace.VMEM)

    # Fully VMEM-resident, no grid: footprint is kilobytes, far below the
    # scoped-VMEM default on v5e/v6e/v7x.  Introduce BlockSpec tiling (and a
    # "parallel" instance grid for v7x's 2 TCs) only when many independent
    # (q, k, v) instances are batched and/or B*R grows large.
    out = pl.pallas_call(
        attention_kernel,
        out_shape=jax.ShapeDtypeStruct((B, dv_pad), jnp.float32),
        in_specs=[vmem() for _ in range(7)],
        out_specs=vmem(),
    )(q, k_flat, v_flat, prep["wqk"], prep["bqk"], prep["wv"], prep["bv"])

    return out[:, :dv]


def attention_ref(q, k, v, params):
    """Pure-JAX reference mirroring the PyTorch forward."""
    dqk = q.shape[-1]
    qh = q @ params["wq"].T + params["bq"]
    kh = k @ params["wk"].T + params["bk"]
    vh = v @ params["wv"].T + params["bv"]
    scores = jnp.einsum("ik,ijk->ij", qh, kh) / (dqk ** 0.5)
    weights = jax.nn.softmax(scores, axis=-1)
    return jnp.sum(vh * weights[..., None], axis=1)


def init_params(key, dim_qk, dim_v):
    """Deterministic nn.Linear-style init: U(-1/sqrt(fan_in), 1/sqrt(fan_in))."""
    ks = jax.random.split(key, 6)
    bq_lim = 1.0 / math.sqrt(dim_qk)
    bv_lim = 1.0 / math.sqrt(dim_v)
    return {
        "wq": jax.random.uniform(ks[0], (dim_qk, dim_qk), jnp.float32, -bq_lim, bq_lim),
        "bq": jax.random.uniform(ks[1], (dim_qk,), jnp.float32, -bq_lim, bq_lim),
        "wk": jax.random.uniform(ks[2], (dim_qk, dim_qk), jnp.float32, -bq_lim, bq_lim),
        "bk": jax.random.uniform(ks[3], (dim_qk,), jnp.float32, -bq_lim, bq_lim),
        "wv": jax.random.uniform(ks[4], (dim_v, dim_v), jnp.float32, -bv_lim, bv_lim),
        "bv": jax.random.uniform(ks[5], (dim_v,), jnp.float32, -bv_lim, bv_lim),
    }


if __name__ == "__main__":
    # shapes implied by the forward:
    #   q: (batch, x_dim), k: (batch, retrieval, x_dim), v: (batch, retrieval, x_dim + y_dim)
    B, R = 2, 8
    dim_qk = 32          # x_dim
    dim_v = 48           # x_dim + y_dim

    key = jax.random.PRNGKey(0)
    kq, kk, kv, kp = jax.random.split(key, 4)
    q = jax.random.normal(kq, (B, dim_qk), jnp.float32)
    k = jax.random.normal(kk, (B, R, dim_qk), jnp.float32)
    v = jax.random.normal(kv, (B, R, dim_v), jnp.float32)
    params = init_params(kp, dim_qk, dim_v)

    # One-time parameter prep (would be cached alongside the model params).
    prep = jax.tree.map(jax.block_until_ready,
                        {k_: v_ for k_, v_ in prepare_params(params, dim_qk, dim_v).items()
                         if isinstance(v_, jnp.ndarray)})
    prep["dim_v"] = dim_v
    prep["dv_pad"] = ((dim_v + 127) // 128) * 128

    # TODO(synk): the PyTorch `discrete_flag` path is only a reshape of the
    # inputs/outputs ((B, num_dim, num_cat) <-> (B, num_dim*num_cat)); callers
    # can do that reshape in plain JAX around this wrapper.

    out = attention_pallas(q, k, v, prep)
    out = jax.block_until_ready(out)

    ref = attention_ref(q, k, v, params)
    assert out.shape == (B, dim_v)
    assert jnp.allclose(out, ref, atol=1e-4, rtol=1e-4), (
        f"max abs err {jnp.max(jnp.abs(out - ref))}")

    print("KERNEL_OK")
</pallas_src>

<mosaic_0001>
module attributes {stable_mosaic.version = 11 : i64} {
  func.func @attention_kernel(%arg0: memref<2x32xf32, #tpu.memory_space<vmem>>, %arg1: memref<16x32xf32, #tpu.memory_space<vmem>>, %arg2: memref<16x48xf32, #tpu.memory_space<vmem>>, %arg3: memref<2x32x32xf32, #tpu.memory_space<vmem>>, %arg4: memref<2x32xf32, #tpu.memory_space<vmem>>, %arg5: memref<48x128xf32, #tpu.memory_space<vmem>>, %arg6: memref<1x128xf32, #tpu.memory_space<vmem>>, %arg7: memref<2x128xf32, #tpu.memory_space<vmem>>) attributes {dimension_semantics = [], scalar_prefetch = 0 : i64, scratch_operands = 0 : i64, tpu.core_type = #tpu.core_type<tc>} {
    %c0 = arith.constant 0 : index
    %c0_0 = arith.constant 0 : index
    %0 = vector.load %arg0[%c0, %c0_0] : memref<2x32xf32, #tpu.memory_space<vmem>>, vector<2x32xf32>
    %c0_1 = arith.constant 0 : index
    %c0_2 = arith.constant 0 : index
    %c0_3 = arith.constant 0 : index
    %1 = vector.load %arg3[%c0_1, %c0_2, %c0_3] : memref<2x32x32xf32, #tpu.memory_space<vmem>>, vector<1x32x32xf32>
    %2 = vector.shape_cast %1 : vector<1x32x32xf32> to vector<32x32xf32>
    %cst = arith.constant dense<0.000000e+00> : vector<2x32xf32>
    %3 = tpu.matmul %0, %2, %cst {dimension_numbers = #tpu.dot_dimension_numbers<[1], [0], [0], [1], [0, 0, 1, 1], [], []>} : vector<2x32xf32>, vector<32x32xf32>, vector<2x32xf32> -> vector<2x32xf32>
    %c0_4 = arith.constant 0 : index
    %c0_5 = arith.constant 0 : index
    %4 = vector.load %arg4[%c0_4, %c0_5] : memref<2x32xf32, #tpu.memory_space<vmem>>, vector<1x32xf32>
    %5 = vector.broadcast %4 : vector<1x32xf32> to vector<2x32xf32>
    %6 = arith.addf %3, %5 : vector<2x32xf32>
    %c0_6 = arith.constant 0 : index
    %c0_7 = arith.constant 0 : index
    %7 = vector.load %arg1[%c0_6, %c0_7] : memref<16x32xf32, #tpu.memory_space<vmem>>, vector<16x32xf32>
    %c1 = arith.constant 1 : index
    %c0_8 = arith.constant 0 : index
    %c0_9 = arith.constant 0 : index
    %8 = vector.load %arg3[%c1, %c0_8, %c0_9] : memref<2x32x32xf32, #tpu.memory_space<vmem>>, vector<1x32x32xf32>
    %9 = vector.shape_cast %8 : vector<1x32x32xf32> to vector<32x32xf32>
    %cst_10 = arith.constant dense<0.000000e+00> : vector<16x32xf32>
    %10 = tpu.matmul %7, %9, %cst_10 {dimension_numbers = #tpu.dot_dimension_numbers<[1], [0], [0], [1], [0, 0, 1, 1], [], []>} : vector<16x32xf32>, vector<32x32xf32>, vector<16x32xf32> -> vector<16x32xf32>
    %c1_11 = arith.constant 1 : index
    %c0_12 = arith.constant 0 : index
    %11 = vector.load %arg4[%c1_11, %c0_12] : memref<2x32xf32, #tpu.memory_space<vmem>>, vector<1x32xf32>
    %12 = vector.broadcast %11 : vector<1x32xf32> to vector<16x32xf32>
    %13 = arith.addf %10, %12 : vector<16x32xf32>
    %c0_13 = arith.constant 0 : index
    %c0_14 = arith.constant 0 : index
    %14 = vector.load %arg2[%c0_13, %c0_14] : memref<16x48xf32, #tpu.memory_space<vmem>>, vector<16x48xf32>
    %c0_15 = arith.constant 0 : index
    %c0_16 = arith.constant 0 : index
    %15 = vector.load %arg5[%c0_15, %c0_16] : memref<48x128xf32, #tpu.memory_space<vmem>>, vector<48x128xf32>
    %cst_17 = arith.constant dense<0.000000e+00> : vector<16x128xf32>
    %16 = tpu.matmul %14, %15, %cst_17 {dimension_numbers = #tpu.dot_dimension_numbers<[1], [0], [0], [1], [0, 0, 1, 1], [], []>} : vector<16x48xf32>, vector<48x128xf32>, vector<16x128xf32> -> vector<16x128xf32>
    %c0_18 = arith.constant 0 : index
    %c0_19 = arith.constant 0 : index
    %17 = vector.load %arg6[%c0_18, %c0_19] : memref<1x128xf32, #tpu.memory_space<vmem>>, vector<1x128xf32>
    %18 = vector.broadcast %17 : vector<1x128xf32> to vector<16x128xf32>
    %19 = arith.addf %16, %18 : vector<16x128xf32>
    %cst_20 = arith.constant dense<0.000000e+00> : vector<2x16xf32>
    %20 = tpu.matmul %6, %13, %cst_20 {dimension_numbers = #tpu.dot_dimension_numbers<[1], [1], [0], [0], [0, 0, 1, 0], [], []>} : vector<2x32xf32>, vector<16x32xf32>, vector<2x16xf32> -> vector<2x16xf32>
    %21 = tpu.iota {dimensions = array<i32: 0>} : vector<2x16xi32>
    %22 = tpu.iota {dimensions = array<i32: 1>} : vector<2x16xi32>
    %c8_i32 = arith.constant 8 : i32
    %23 = vector.broadcast %c8_i32 : i32 to vector<2x16xi32>
    %24 = arith.muli %21, %23 : vector<2x16xi32>
    %25 = arith.subi %22, %24 : vector<2x16xi32>
    %c0_i32 = arith.constant 0 : i32
    %26 = vector.broadcast %c0_i32 : i32 to vector<2x16xi32>
    %27 = arith.cmpi sge, %25, %26 : vector<2x16xi32>
    %c8_i32_21 = arith.constant 8 : i32
    %28 = vector.broadcast %c8_i32_21 : i32 to vector<2x16xi32>
    %29 = arith.cmpi slt, %25, %28 : vector<2x16xi32>
    %30 = arith.andi %27, %29 : vector<2x16xi1>
    %cst_22 = arith.constant -1.000000e+30 : f32
    %31 = vector.broadcast %cst_22 : f32 to vector<2x16xf32>
    %32 = arith.select %30, %20, %31 : vector<2x16xi1>, vector<2x16xf32>
    %cst_23 = arith.constant dense<0xFF800000> : vector<2xf32>
    %33 = vector.multi_reduction <maximumf>, %32, %cst_23 [1] : vector<2x16xf32> to vector<2xf32>
    %34 = vector.shape_cast %33 : vector<2xf32> to vector<2x1xf32>
    %35 = vector.broadcast %34 : vector<2x1xf32> to vector<2x16xf32>
    %36 = arith.subf %32, %35 : vector<2x16xf32>
    %37 = math.exp %36 : vector<2x16xf32>
    %cst_24 = arith.constant dense<0.000000e+00> : vector<2xf32>
    %38 = vector.multi_reduction <add>, %37, %cst_24 [1] : vector<2x16xf32> to vector<2xf32>
    %39 = vector.shape_cast %38 : vector<2xf32> to vector<2x1xf32>
    %cst_25 = arith.constant dense<0.000000e+00> : vector<2x128xf32>
    %40 = tpu.matmul %37, %19, %cst_25 {dimension_numbers = #tpu.dot_dimension_numbers<[1], [0], [0], [1], [0, 0, 1, 1], [], []>} : vector<2x16xf32>, vector<16x128xf32>, vector<2x128xf32> -> vector<2x128xf32>
    %41 = tpu.reciprocal %39 : vector<2x1xf32> -> vector<2x1xf32>
    %42 = vector.broadcast %41 : vector<2x1xf32> to vector<2x128xf32>
    %43 = arith.mulf %40, %42 : vector<2x128xf32>
    %c0_26 = arith.constant 0 : index
    %c0_27 = arith.constant 0 : index
    %44 = vector.load %arg7[%c0_26, %c0_27] : memref<2x128xf32, #tpu.memory_space<vmem>>, vector<2x128xf32>
    tpu.vector_store %arg7[%c0_26, %c0_27], %43 {strides = array<i32>} : memref<2x128xf32, #tpu.memory_space<vmem>>, vector<2x128xf32>,
    return
  }
}

</mosaic_0001>

<bundles_post_ra>
// kernel: tpu_custom_call.1
= control target key start
LH: loop header
LB: loop body
LE: loop exit
PB: predicated region body
PF: predicated region fallthrough
CT: control target
= control target key end

     0   :  { %12 = vsyncpa [#allocation3], 0  ;;  %s1000_s0 = inlined_call_operand.hbm [shape: f32[2,32], index: 0, kind: input, shape index: {}]   ;;  %s1001_s1 = inlined_call_operand.hbm [shape: f32[16,32], index: 1, kind: input, shape index: {}]   ;;  %s1002_s2 = inlined_call_operand.hbm [shape: f32[16,48], index: 2, kind: input, shape index: {}]   ;;  %s1003_s3 = inlined_call_operand.hbm [shape: f32[2,32,32], index: 3, kind: input, shape index: {}]   ;;  %s1004_s4 = inlined_call_operand.vmem [shape: f32[2,32], index: 4, kind: input, shape index: {}]   ;;  %s1005_s5 = inlined_call_operand.hbm [shape: f32[48,128], index: 5, kind: input, shape index: {}]   ;;  %s1006_s6 = inlined_call_operand.vmem [shape: f32[1,128], index: 6, kind: input, shape index: {}]   ;;  %s1007_s7 = inlined_call_operand.hbm [shape: f32[2,128], index: 7, kind: output, shape index: {}]  }
   0x1   :  { %13 = vsyncpa [#allocation6], 0 }
   0x2   :  { %14 = vsyncpa [#allocation9], 0 }
   0x3   :  { %15 = vsyncpa [#allocation4], 0  ;;  %s836_s24 = smov [#allocation5]   ;;  %s696_s28 = scalar_lea.hbm %s1001_s1, 256 }
   0x4   :  { %s31_s25 = sshll.u32 %s836_s24, 4  ;;  %p697_p0 = scmp.ne.s32.totalorder %s1001_s1, %s696_s28  ;;  %s32_s25 = int_to_ptr.vmem [resolvable:$true] %s31_s25 }
   0x5   :  { %p700_p1 = scmp.lt.u32.totalorder %s696_s28, %s1001_s1 }
   0x7   :  { %p702_p2 = pnand %p700_p1, %p697_p0 }
   0x9   :  { %705 = shalt.err (!%p702_p2)
}
   0xa   :  { %s706_s10 = scalar_lea.vmem %s32_s25, 256  ;;  %p711_p4 = scmp.lt.s32.totalorder %s32_s25, %s32_s25 }
   0xb   :  { %p707_p3 = scmp.ne.s32.totalorder %s32_s25, %s706_s10  ;;  %p712_p5 = scmp.lt.s32.totalorder %s706_s10, %s706_s10 }
   0xd   :  { %p713_p6 = por %p712_p5, %p711_p4 }
   0xf   :  { %p714_p7 = pnand %p713_p6, %p707_p3 }
  0x11   :  { %717 = shalt.err (!%p714_p7)
}
  0x12   :  { %s837_s11 = smov 128   ;;  %s838_s12 = smov 8  }
  0x13   :  { %37 = dma.hbm_to_vmem [thread:$0]  %s1001_s1, 256, %s32_s25, [#allocation6], %s837_s11, %s837_s11, %s838_s12  }
  0x14   :  { %s839_s15 = smov [#allocation8]   ;;  %s840_s17 = smov [#allocation2]  }
  0x15   :  { %s55_s16 = sshll.u32 %s839_s15, 4  ;;  %s22_s18 = sshll.u32 %s840_s17, 4  ;;  %s56_s16 = int_to_ptr.vmem [resolvable:$true] %s55_s16  ;;  %s23_s18 = int_to_ptr.vmem [resolvable:$true] %s22_s18 }
  0x16   :  { %s718_s21 = scalar_lea.hbm %s1003_s3, 1024 }
  0x17   :  { %p719_p8 = scmp.ne.s32.totalorder %s1003_s3, %s718_s21  ;;  %p722_p9 = scmp.lt.u32.totalorder %s718_s21, %s1003_s3 }
  0x19   :  { %p724_p10 = pnand %p722_p9, %p719_p8 }
  0x1b   :  { %727 = shalt.err (!%p724_p10)
}
  0x1c   :  { %s728_s1 = scalar_lea.vmem %s56_s16, 1024  ;;  %p733_p12 = scmp.lt.s32.totalorder %s56_s16, %s56_s16 }
  0x1d   :  { %p729_p11 = scmp.ne.s32.totalorder %s56_s16, %s728_s1  ;;  %p734_p13 = scmp.lt.s32.totalorder %s728_s1, %s728_s1 }
  0x1f   :  { %p735_p0 = por %p734_p13, %p733_p12 }
  0x21   :  { %p736_p1 = pnand %p735_p0, %p729_p11 }
  0x23   :  { %739 = shalt.err (!%p736_p1)
}
  0x24   :  { %61 = dma.hbm_to_vmem [thread:$0]  %s1003_s3, 1024, %s56_s16, [#allocation9], %s837_s11, %s837_s11, %s838_s12  }
  0x25   :  { %s740_s30 = scalar_lea.hbm %s1000_s0, 32 }
  0x26   :  { %p741_p2 = scmp.ne.s32.totalorder %s1000_s0, %s740_s30  ;;  %p744_p3 = scmp.lt.u32.totalorder %s740_s30, %s1000_s0 }
  0x28   :  { %p746_p4 = pnand %p744_p3, %p741_p2 }
  0x2a   :  { %749 = shalt.err (!%p746_p4)
}
  0x2b   :  { %s750_s14 = scalar_lea.vmem %s23_s18, 32  ;;  %p755_p6 = scmp.lt.s32.totalorder %s23_s18, %s23_s18 }
  0x2c   :  { %p751_p5 = scmp.ne.s32.totalorder %s23_s18, %s750_s14  ;;  %p756_p7 = scmp.lt.s32.totalorder %s750_s14, %s750_s14 }
  0x2e   :  { %p757_p8 = por %p756_p7, %p755_p6 }
  0x30   :  { %p758_p9 = pnand %p757_p8, %p751_p5 }
  0x32   :  { %761 = shalt.err (!%p758_p9)
}
  0x33   :  { %25 = dma.hbm_to_vmem [thread:$0]  %s1000_s0, 32, %s23_s18, [#allocation3]  }
  0x34   :  { %s841_s16 = smov [#allocation7]   ;;  %s842_s19 = smov [#allocation10]  }
  0x35   :  { %s43_s17 = sshll.u32 %s841_s16, 4  ;;  %s69_s20 = sshll.u32 %s842_s19, 4  ;;  %s44_s17 = int_to_ptr.vmem [resolvable:$true] %s43_s17  ;;  %s70_s20 = int_to_ptr.vmem [resolvable:$true] %s69_s20 }
  0x36   :  { %s762_s23 = scalar_lea.hbm %s1002_s2, 256 }
  0x37   :  { %p763_p10 = scmp.ne.s32.totalorder %s1002_s2, %s762_s23  ;;  %p766_p11 = scmp.lt.u32.totalorder %s762_s23, %s1002_s2 }
  0x39   :  { %p768_p12 = pnand %p766_p11, %p763_p10 }
  0x3b   :  { %771 = shalt.err (!%p768_p12)
}
  0x3c   :  { %s772_s0 = scalar_lea.vmem %s44_s17, 256  ;;  %p777_p0 = scmp.lt.s32.totalorder %s44_s17, %s44_s17 }
  0x3d   :  { %p773_p13 = scmp.ne.s32.totalorder %s44_s17, %s772_s0  ;;  %p778_p1 = scmp.lt.s32.totalorder %s772_s0, %s772_s0 }
  0x3f   :  { %p779_p2 = por %p778_p1, %p777_p0 }
  0x41   :  { %p780_p3 = pnand %p779_p2, %p773_p13 }
  0x43   :  { %783 = shalt.err (!%p780_p3)
}
  0x44   :  { %49 = dma.hbm_to_vmem [thread:$0]  %s1002_s2, 256, %s44_s17, [#allocation6], %s837_s11, %s837_s11, %s838_s12  }
  0x45   :  { %s784_s30 = scalar_lea.hbm %s1005_s5, 768 }
  0x46   :  { %p785_p4 = scmp.ne.s32.totalorder %s1005_s5, %s784_s30  ;;  %p788_p5 = scmp.lt.u32.totalorder %s784_s30, %s1005_s5 }
  0x48   :  { %p790_p6 = pnand %p788_p5, %p785_p4 }
  0x4a   :  { %793 = shalt.err (!%p790_p6)
}
  0x4b   :  { %s794_s14 = scalar_lea.vmem %s70_s20, 768  ;;  %p799_p8 = scmp.lt.s32.totalorder %s70_s20, %s70_s20 }
  0x4c   :  { %p795_p7 = scmp.ne.s32.totalorder %s70_s20, %s794_s14  ;;  %p800_p9 = scmp.lt.s32.totalorder %s794_s14, %s794_s14 }
  0x4e   :  { %p801_p10 = por %p800_p9, %p799_p8 }
  0x50   :  { %p802_p11 = pnand %p801_p10, %p795_p7 }
  0x52   :  { %805 = shalt.err (!%p802_p11)
}
  0x53   :  { %75 = dma.hbm_to_vmem [thread:$0]  %s1005_s5, 768, %s70_s20, [#allocation9], %s837_s11, %s837_s11, %s838_s12  }
  0x54   :  { %828 = dma.done.wait [#allocation3], 32  }
  0x55   :  { %829 = vsyncadd [#allocation3], 4294967264 }
  0x56   :  { %830 = dma.done.wait [#allocation6], 512  }
  0x57   :  { %831 = vsyncadd [#allocation6], 4294966784 }
  0x58   :  { %832 = dma.done.wait [#allocation9], 1792  }
  0x59   :  { %833 = vsyncadd [#allocation9], 4294965504  ;;  %v843_v0 = vmov 0.0|0.0   ;;  %vm844_vm0 = vmmov 0   ;;  %v845_v1 = vmov 0.0   ;;  %vm103_vm1 = vcmask 261120  }
  0x5a   :  { %648 = vmatprep.subr.bf16.mxu0 %v843_v0  ;;  %605 = vmatprep.mubr.msk.f32.mxu0 %vm844_vm0, %v845_v1  ;;  %v180_v2 = vld [vmem:[#allocation8 + $0x20] sm:$0xff]  ;;  %v181_v3 = vld [vmem:[#allocation8 + $0x28] sm:$0xff]  ;;  %v182_v4 = vld [vmem:[#allocation8 + $0x30] sm:$0xff]  ;;  %vm285_vm2 = vcmask 392192   ;;  %v446_v38 = vlaneseq  ;;  %vm456_vm7 = vcmask 123904   ;;  %vm466_vm8 = vcmask 130048  }
  0x5b   :  { %v654_v5 = vpack.c.bf16 %v181_v3, %v180_v2  ;;  %v183_v6 = vld [vmem:[#allocation8 + $0x38] sm:$0xff]  ;;  %v177_v7 = vld [vmem:[#allocation5] sm:$0xff]  ;;  %v95_v10 = vld [vmem:[#allocation8 + $0x8] sm:$0xff]  ;;  %s846_s17 = smov [#allocation11]  }
  0x5c   :  { %v658_v8 = vpack.c.bf16 %v183_v6, %v182_v4  ;;  %616 = vmatprep.mubr.msk.f32.mxu1 %vm103_vm1, %v177_v7  ;;  %v94_v9 = vld [vmem:[#allocation8] sm:$0xff]  ;;  %v96_v11 = vld [vmem:[#allocation8 + $0x10] sm:$0xff]  ;;  %v97_v13 = vld [vmem:[#allocation8 + $0x18] sm:$0xff]  ;;  %v447_v39 = vshrl.u32 %v446_v38, 7  ;;  %v449_v40 = vand.u32 127, %v446_v38  ;;  %s549_s19 = sshll.u32 %s846_s17, 4  ;;  %s550_s19 = int_to_ptr.vmem [resolvable:$true] %s549_s19 }
  0x5d   :  { %655 = vmatprep.subr.bf16.mxu1 %v654_v5  ;;  %v649_v12 = vpack.c.bf16 %v95_v10, %v94_v9  ;;  %v652_v14 = vpack.c.bf16 %v97_v13, %v96_v11  ;;  %v178_v15 = vld [vmem:[#allocation5 + $0x8] sm:$0xff]  ;;  %v93_v16 = vld [vmem:[#allocation2] sm:$0x3]  ;;  %v272_v17 = vld [vmem:[#allocation10] sm:$0xff]  ;;  %p811_p13 = scmp.lt.s32.totalorder %s550_s19, %s550_s19 }
  0x5e   :  { %657 = vmatpush3.bf16.msra.mxu1 %v654_v5  ;;  %v273_v18 = vld [vmem:[#allocation10 + $0x8] sm:$0xff]  ;;  %v274_v19 = vld [vmem:[#allocation10 + $0x10] sm:$0xff]  ;;  %v275_v21 = vld [vmem:[#allocation10 + $0x18] sm:$0xff]  ;;  %v450_v41 = vmul.u32 8, %v447_v39 }
  0x5f   :  { %659 = vmatprep.subr.bf16.mxu1 %v658_v8  ;;  %650 = vmatpush3.bf16.msra.mxu0 %v649_v12  ;;  %v662_v20 = vpack.c.bf16 %v273_v18, %v272_v17  ;;  %v666_v22 = vpack.c.bf16 %v275_v21, %v274_v19  ;;  %v276_v23 = vld [vmem:[#allocation10 + $0x20] sm:$0xff]  ;;  %v277_v24 = vld [vmem:[#allocation10 + $0x28] sm:$0xff]  ;;  %v270_v25 = vld [vmem:[#allocation7] sm:$0xff] }
  0x60   :  { %651 = vmatprep.subr.bf16.mxu0 %v843_v0  ;;  %v670_v26 = vpack.c.bf16 %v277_v24, %v276_v23  ;;  %v271_v27 = vld [vmem:[#allocation7 + $0x8] sm:$0xff]  ;;  %vm676_vm3 = vmpackc.low %vm103_vm1, %vm103_vm1  ;;  %v451_v42 = vsub.s32 %v449_v40, %v450_v41 }
  0x61   :  { %v562_v28 = vld [vmem:[%s1004_s4 + $0x1] ss:$0 sm:$0xff]  ;;  %v560_v36 = vld [vmem:[%s1004_s4] ss:$0 sm:$0xff] }
  0x62   :  { %661 = vmatpush3.bf16.msra.mxu1 %v658_v8  ;;  %vm452_vm4 = vcmp.ge.s32.totalorder %v451_v42, 0  ;;  %vm453_vm5 = vcmp.lt.s32.totalorder %v451_v42, 8  ;;  %v565_v48 = vld [vmem:[%s1006_s6] ss:$0 sm:$0xff]  ;;  %s806_s6 = scalar_lea.vmem %s550_s19, 32 }
  0x63   :  { %653 = vmatpush3.bf16.msra.mxu0 %v652_v14  ;;  %674 = vmatprep.subr.bf16.mxu1 %v843_v0  ;;  %vm454_vm6 = vmand %vm452_vm4, %vm453_vm5  ;;  %p807_p12 = scmp.ne.s32.totalorder %s550_s19, %s806_s6  ;;  %p812_p0 = scmp.lt.s32.totalorder %s806_s6, %s806_s6 }
  0x64   :  { %663 = vmatprep.subr.bf16.mxu0 %v662_v20 }
  0x65   :  { %617 = vmatmul.mubr.msk.f32.vlgmr.msra.gmra.mrb[0].mxu1 %vm103_vm1, %v178_v15  ;;  %p813_p1 = por %p812_p0, %p811_p13 }
  0x66   :  { %606 = vmatmul.mubr.msk.f32.vlgmr.msra.gmra.mrb[0].mxu0 %vm103_vm1, %v93_v16  ;;  %638 = vmatprep.mubr.msk.f32.mxu1 %vm844_vm0, %v845_v1 }
  0x67   :  { %631 = vmatprep.mubr.msk.f32.mxu0 %vm285_vm2, %v270_v25  ;;  %665 = vmatpush3.bf16.msra.mxu0 %v662_v20  ;;  %p814_p2 = pnand %p813_p1, %p807_p12 }
  0x68   :  { %667 = vmatprep.subr.bf16.mxu0 %v666_v22 }
  0x6b   :  { %669 = vmatpush3.bf16.msra.mxu0 %v666_v22 }
  0x6c   :  { %671 = vmatprep.subr.bf16.mxu0 %v670_v26 }
  0x6f   :  { %673 = vmatpush3.bf16.msra.mxu0 %v670_v26 }
  0x72   :  { %632 = vmatmul.mubr.msk.f32.vlgmr.msra.gmra.mrb[2].mxu0 %vm285_vm2, %v271_v27 }
 0x138   :  { %v618_v29 = vpop.f32.mrb[0].mxu1 }
 0x139   :  { %v267_v30 = vadd.f32 %v618_v29, %v562_v28  ;;  %v261_v31 = vpop.f32.mrb[1].mxu1  ;;  %v173_v32 = vpop.f32.mrb[0].mxu0 }
 0x13a   :  { %v262_v33 = vadd.f32 %v562_v28, %v261_v31  ;;  %v607_v34 = vpop.f32.mrb[1].mxu0  ;;  %v174_v37 = vadd.f32 %v560_v36, %v173_v32 }
 0x13c   :  { %v675_v35 = vpack.c.bf16 %v267_v30, %v262_v33 }
 0x13e   :  { %677 = vmatpush3.bf16.xpose.msk.msra.mxu1 %vm676_vm3, %v675_v35 }
 0x13f   :  { %678 = vmatprep.subr.bf16.mxu1 %v843_v0 }
 0x145   :  { %639 = vmatmul.mubr.msk.f32.vlgmr.msra.gmra.mrb[2].mxu1 %vm103_vm1, %v174_v37  ;;  %v633_v47 = vpop.f32.mrb[2].mxu0 }
 0x146   :  { %645 = vmatprep.mubr.msk.f32.mxu1 %vm844_vm0, %v845_v1  ;;  %v364_v49 = vadd.f32 %v633_v47, %v565_v48  ;;  %v358_v50 = vpop.f32.mrb[3].mxu0 }
 0x147   :  { %v359_v51 = vadd.f32 %v565_v48, %v358_v50 }
 0x149   :  { %v679_v52 = vpack.c.bf16 %v364_v49, %v359_v51 }
 0x14b   :  { %680 = vmatpush3.bf16.msra.mxu1 %v679_v52 }
 0x218   :  { %v442_v43 = vpop.f32.mrb[2].mxu1 }
 0x219   :  { %v455_v44 = vsel %vm454_vm6, %v442_v43, -1e+30  ;;  %v640_v45 = vpop.f32.mrb[3].mxu1 }
 0x21a   :  { %v457_v46 = vsel %vm456_vm7, %v455_v44, -inf }
 0x21b   :  { %458 = vmax.xlane.f32.xlu0 %v457_v46 }
 0x2a8   :  { %v459_v53 = vpop.xlane.xlu0 %458 }
 0x2a9   :  { %v460_v54 = vsub.f32 %v455_v44, %v459_v53 }
 0x2ab   :  { %v461_v55 = vmul.f32 1.442695, %v460_v54 }
 0x2ad   :  { %692 = vpow2.f32 %v461_v55 }
 0x2b7   :  { %v693_v56 = vpop.eup %692 }
 0x2b8   :  { %646 = vmatmul.mubr.msk.f32.vlgmr.msra.gmra.mrb[4].mxu1 %vm466_vm8, %v693_v56  ;;  %v463_v57 = vsel %vm456_vm7, %v693_v56, 0.0 }
 0x2b9   :  { %464 = vadd.xlane.f32.xlu0 %v463_v57 }
 0x346   :  { %v465_v58 = vpop.xlane.xlu0 %464 }
 0x347   :  { %694 = vrcp.f32 %v465_v58 }
 0x351   :  { %v695_v59 = vpop.eup %694 }
 0x38b   :  { %v536_v60 = vpop.f32.mrb[4].mxu1 }
 0x38c   :  { %v541_v61 = vmul.f32 %v695_v59, %v536_v60  ;;  %v647_v62 = vpop.f32.mrb[5].mxu1 }
 0x38e   :  { %542 = vst [vmem:[#allocation11] sm:$0x3] %v541_v61 }
 0x38f   :  { %817 = shalt.err (!%p814_p2)
}
 0x390   :  { %s818_s22 = scalar_lea.hbm %s1007_s7, 32 }
 0x391   :  { %p819_p3 = scmp.ne.s32.totalorder %s1007_s7, %s818_s22  ;;  %p822_p4 = scmp.lt.u32.totalorder %s818_s22, %s1007_s7 }
 0x393   :  { %p824_p5 = pnand %p822_p4, %p819_p3 }
 0x395   :  { %827 = shalt.err (!%p824_p5)
}
 0x396   :  { %552 = dma.vmem_to_hbm [thread:$0]  %s550_s19, 32, %s1007_s7, [#allocation4]  }
 0x397   :  { %834 = dma.done.wait [#allocation4], 32  }
 0x398   :  { %835 = vsyncadd [#allocation4], 4294967264 }
 0x399   :  { %556 = vsyncpa [#allocation3], 1 }
 0x39a   :  { %557 = vsyncpa [#allocation6], 1 }
 0x39b   :  { %558 = vsyncpa [#allocation9], 1 }
 0x39c   :  { %559 = vsyncpa [#allocation4], 1 }

</bundles_post_ra>
